<compile_context>
chip_gen: v7x
topology: tpu7x:2x2x1
jax: 0.10.0
libtpu: 0.0.40
codegen_flags: <defaults>
</compile_context>

<pallas_src>
import functools
import math

import jax
import jax.numpy as jnp
from jax.experimental import pallas as pl
from jax.experimental.pallas import tpu as pltpu

# ----------------------------- configuration -----------------------------
BATCH = 2
IN_CH = 4
IMG = 16
PATCH = 4
EMBED = 32
HEADS = 4
MLP_HIDDEN = 64
NUM_STAGES = 2          # len(encoder.stages); nblocks = min(12, 2) = 2
LN_EPS = 1e-5
RETURN_ATTN = True


# ----------------------------- in-kernel helpers -----------------------------
def _ln(x, g, b, eps):
    mean = jnp.mean(x, axis=-1, keepdims=True)
    var = jnp.mean(jnp.square(x - mean), axis=-1, keepdims=True)
    return (x - mean) * jax.lax.rsqrt(var + eps) * g + b


def _gelu(x):
    # TODO(synk): PyTorch nn.GELU defaults to exact erf; tanh approximation used here.
    c = math.sqrt(2.0 / math.pi)
    return 0.5 * x * (1.0 + jnp.tanh(c * (x + 0.044715 * x * x * x)))


# ------------------------- fused patch-embedding kernel -------------------------
def _embed_kernel(p_ref, w_ref, b_ref, g_ref, beta_ref, o_ref, *, eps):
    t = jnp.dot(p_ref[...], w_ref[...],
                preferred_element_type=jnp.float32) + b_ref[...]
    o_ref[...] = _ln(t, g_ref[...], beta_ref[...], eps)


def embed_tokens(patches, w, b, g, beta):
    M, K = patches.shape
    D = w.shape[1]
    return pl.pallas_call(
        functools.partial(_embed_kernel, eps=LN_EPS),
        out_shape=jax.ShapeDtypeStruct((M, D), jnp.float32),
        grid=(1,),
        in_specs=[pl.BlockSpec((M, K), lambda i: (0, 0)),
                  pl.BlockSpec((K, D), lambda i: (0, 0)),
                  pl.BlockSpec((1, D), lambda i: (0, 0)),
                  pl.BlockSpec((1, D), lambda i: (0, 0)),
                  pl.BlockSpec((1, D), lambda i: (0, 0))],
        out_specs=pl.BlockSpec((M, D), lambda i: (0, 0)),
    )(patches, w, b.reshape(1, D), g.reshape(1, D), beta.reshape(1, D))


# ------------------------------- final LayerNorm -------------------------------
def _layernorm_kernel(x_ref, g_ref, b_ref, o_ref, *, eps):
    o_ref[...] = _ln(x_ref[...], g_ref[...], b_ref[...], eps)


def layernorm(x, g, b):
    M, D = x.shape
    return pl.pallas_call(
        functools.partial(_layernorm_kernel, eps=LN_EPS),
        out_shape=jax.ShapeDtypeStruct((M, D), jnp.float32),
        grid=(1,),
        in_specs=[pl.BlockSpec((M, D), lambda i: (0, 0)),
                  pl.BlockSpec((1, D), lambda i: (0, 0)),
                  pl.BlockSpec((1, D), lambda i: (0, 0))],
        out_specs=pl.BlockSpec((M, D), lambda i: (0, 0)),
    )(x, g.reshape(1, D), b.reshape(1, D))


# --------------------------- fused CvT stage kernel ---------------------------
def _stage_kernel(h_ref, ln1_g, ln1_b, conv_w, conv_b, wqkv, bqkv, wo, bo,
                  ln2_g, ln2_b, w1, b1, w2, b2,
                  out_ref, probs_ref, pad_ref, conv_ref,
                  *, Hp, Wp, heads, eps):
    N = out_ref.shape[1]
    D = out_ref.shape[2]
    hd = D // heads
    scale = 1.0 / math.sqrt(hd)

    h = h_ref[0]                                          # (N, D) tokens

    # ---- pre-attention LayerNorm ----
    x = _ln(h, ln1_g[...], ln1_b[...], eps)               # (N, D)

    # ---- fused 3-way depthwise 3x3 conv (q/k/v channels concatenated -> 3D lanes)
    x3 = jnp.concatenate([x, x, x], axis=-1)              # (N, 3D)

    # zero-padded halo in VMEM scratch (no wrapper-side jnp.pad / HBM copy)
    pad_ref[...] = jnp.zeros_like(pad_ref)
    for r in range(Hp):                                   # row-major token layout
        pad_ref[1 + r, 1:Wp + 1, :] = x3[r * Wp:(r + 1) * Wp, :]

    acc = jnp.zeros((Hp, Wp, 3 * D), jnp.float32)
    for kh in range(3):
        for kw in range(3):
            k = kh * 3 + kw
            acc = acc + pad_ref[kh:kh + Hp, kw:kw + Wp, :] * conv_w[k:k + 1, :]
    acc = acc + conv_b[...]

    # flatten spatial back to tokens through the scratch ref (layout-safe)
    for r in range(Hp):
        conv_ref[r * Wp:(r + 1) * Wp, :] = acc[r]
    conv_flat = conv_ref[...]                             # (N, 3D)

    # ---- fused q/k/v linear projection: single MXU pass with block-diag weight
    qkv = jnp.dot(conv_flat, wqkv[...],
                  preferred_element_type=jnp.float32) + bqkv[...]   # (N, 3D)

    # ---- multi-head self-attention, head split by lane slicing ----
    outs = []
    for hh in range(heads):
        qh = qkv[:, hh * hd:(hh + 1) * hd]
        kh_ = qkv[:, D + hh * hd:D + (hh + 1) * hd]
        vh = qkv[:, 2 * D + hh * hd:2 * D + (hh + 1) * hd]
        s = jax.lax.dot_general(qh, kh_, (((1,), (1,)), ((), ())),
                                preferred_element_type=jnp.float32) * scale
        s = s - jnp.max(s, axis=-1, keepdims=True)
        e = jnp.exp(s)
        p = e * pl.reciprocal(jnp.sum(e, axis=-1, keepdims=True), approx=True)
        probs_ref[0, hh] = p
        outs.append(jnp.dot(p, vh, preferred_element_type=jnp.float32))
    attn_out = jnp.concatenate(outs, axis=-1)             # (N, D)

    # ---- output projection + residual ----
    h = h + jnp.dot(attn_out, wo[...],
                    preferred_element_type=jnp.float32) + bo[...]

    # ---- pre-MLP LayerNorm + MLP (GELU) + residual ----
    y = _ln(h, ln2_g[...], ln2_b[...], eps)
    mid = _gelu(jnp.dot(y, w1[...], preferred_element_type=jnp.float32) + b1[...])
    h = h + jnp.dot(mid, w2[...], preferred_element_type=jnp.float32) + b2[...]

    out_ref[0] = h


def cvt_stage(h, sp, Hp, Wp):
    B, N, D = h.shape
    Dh = sp["w1"].shape[1]

    def vec_spec():
        return pl.BlockSpec((1, D), lambda b: (0, 0))

    kernel = functools.partial(_stage_kernel, Hp=Hp, Wp=Wp, heads=HEADS, eps=LN_EPS)
    h_out, probs = pl.pallas_call(
        kernel,
        out_shape=(jax.ShapeDtypeStruct((B, N, D), jnp.float32),
                   jax.ShapeDtypeStruct((B, HEADS, N, N), jnp.float32)),
        grid=(B,),
        in_specs=[
            pl.BlockSpec((1, N, D), lambda b: (b, 0, 0)),            # tokens
            vec_spec(), vec_spec(),                                  # ln1 g, b
            pl.BlockSpec((9, 3 * D), lambda b: (0, 0)),              # fused conv w
            pl.BlockSpec((1, 3 * D), lambda b: (0, 0)),              # fused conv b
            pl.BlockSpec((3 * D, 3 * D), lambda b: (0, 0)),          # block-diag Wqkv
            pl.BlockSpec((1, 3 * D), lambda b: (0, 0)),              # bqkv
            pl.BlockSpec((D, D), lambda b: (0, 0)),                  # Wo
            vec_spec(),                                              # bo
            vec_spec(), vec_spec(),                                  # ln2 g, b
            pl.BlockSpec((D, Dh), lambda b: (0, 0)),                 # W1
            pl.BlockSpec((1, Dh), lambda b: (0, 0)),                 # b1
            pl.BlockSpec((Dh, D), lambda b: (0, 0)),                 # W2
            vec_spec(),                                              # b2
        ],
        out_specs=(pl.BlockSpec((1, N, D), lambda b: (b, 0, 0)),
                   pl.BlockSpec((1, HEADS, N, N), lambda b: (b, 0, 0, 0))),
        scratch_shapes=[pltpu.VMEM((Hp + 2, Wp + 2, 3 * D), jnp.float32),
                        pltpu.VMEM((N, 3 * D), jnp.float32)],
        compiler_params=pltpu.CompilerParams(dimension_semantics=("parallel",)),
    )(h,
      sp["ln1_g"].reshape(1, D), sp["ln1_b"].reshape(1, D),
      sp["conv_w"], sp["conv_b"].reshape(1, 3 * D),
      sp["wqkv"], sp["bqkv"].reshape(1, 3 * D),
      sp["wo"], sp["bo"].reshape(1, D),
      sp["ln2_g"].reshape(1, D), sp["ln2_b"].reshape(1, D),
      sp["w1"], sp["b1"].reshape(1, Dh),
      sp["w2"], sp["b2"].reshape(1, D))
    return h_out, [probs]


# ------------------------------- model wrapper -------------------------------
def cvt_encoder_forward(x, params, return_attn_wgts=RETURN_ATTN):
    # x: NCHW (PyTorch conv convention)
    B, C, H, W = x.shape
    p = PATCH
    Hp, Wp = H // p, W // p
    N, D = Hp * Wp, EMBED

    x_nhwc = jnp.transpose(x, (0, 2, 3, 1))
    patches = (x_nhwc.reshape(B, Hp, p, Wp, p, C)
                     .transpose(0, 1, 3, 2, 4, 5)
                     .reshape(B * N, p * p * C))
    tokens = embed_tokens(patches, params["patch_w"], params["patch_b"],
                          params["emb_ln_g"], params["emb_ln_b"])
    h = tokens.reshape(B, N, D)

    # NOTE: gradient checkpointing (first checkpoint_nchunks stages) does not
    # change forward semantics, so the plain forward is used for every stage.
    all_attn = [] if return_attn_wgts else None
    for sp in params["stages"]:
        h, attn_weights = cvt_stage(h, sp, Hp, Wp)
        if return_attn_wgts and attn_weights is not None:
            all_attn.extend(attn_weights)

    h = layernorm(h.reshape(B * N, D),
                  params["final_ln_g"], params["final_ln_b"]).reshape(B, N, D)
    if return_attn_wgts:
        return h, all_attn
    return h


# ------------------------------- parameter init -------------------------------
def init_params(key):
    def normal(k, shape, scale=0.02):
        return (scale * jax.random.normal(k, shape)).astype(jnp.float32)

    keys = iter(jax.random.split(key, 64))
    D = EMBED
    params = {
        "patch_w": normal(next(keys), (PATCH * PATCH * IN_CH, D)),
        "patch_b": jnp.zeros((D,), jnp.float32),
        "emb_ln_g": jnp.ones((D,), jnp.float32),
        "emb_ln_b": jnp.zeros((D,), jnp.float32),
        "final_ln_g": jnp.ones((D,), jnp.float32),
        "final_ln_b": jnp.zeros((D,), jnp.float32),
        "stages": [],
    }

    def dwconv_params():
        # depthwise conv weight (9, D) + eval-mode BatchNorm folded in
        w = normal(next(keys), (9, D))
        gamma = jnp.ones((D,), jnp.float32)
        beta = jnp.zeros((D,), jnp.float32)
        mean = normal(next(keys), (D,), scale=0.01)
        var = jnp.full((D,), 0.9, jnp.float32)
        s = gamma * jax.lax.rsqrt(var + 1e-5)
        return w * s[None, :], beta - mean * s

    for _ in range(NUM_STAGES):
        cq_w, cq_b = dwconv_params()
        ck_w, ck_b = dwconv_params()
        cv_w, cv_b = dwconv_params()
        wq = normal(next(keys), (D, D))
        wk = normal(next(keys), (D, D))
        wv = normal(next(keys), (D, D))
        bq = jnp.zeros((D,), jnp.float32)
        bk = jnp.zeros((D,), jnp.float32)
        bv = jnp.zeros((D,), jnp.float32)
        # block-diagonal fused QKV weight: concat(conv_q, conv_k, conv_v) @ Wqkv
        # reproduces [conv_q @ Wq, conv_k @ Wk, conv_v @ Wv] in one MXU pass.
        wqkv = jnp.zeros((3 * D, 3 * D), jnp.float32)
        wqkv = wqkv.at[0:D, 0:D].set(wq)
        wqkv = wqkv.at[D:2 * D, D:2 * D].set(wk)
        wqkv = wqkv.at[2 * D:3 * D, 2 * D:3 * D].set(wv)
        sp = {
            "ln1_g": jnp.ones((D,), jnp.float32), "ln1_b": jnp.zeros((D,), jnp.float32),
            "ln2_g": jnp.ones((D,), jnp.float32), "ln2_b": jnp.zeros((D,), jnp.float32),
            "conv_w": jnp.concatenate([cq_w, ck_w, cv_w], axis=-1),   # (9, 3D)
            "conv_b": jnp.concatenate([cq_b, ck_b, cv_b]),            # (3D,)
            "wqkv": wqkv,
            "bqkv": jnp.concatenate([bq, bk, bv]),
            "wo": normal(next(keys), (D, D)), "bo": jnp.zeros((D,), jnp.float32),
            "w1": normal(next(keys), (D, MLP_HIDDEN)),
            "b1": jnp.zeros((MLP_HIDDEN,), jnp.float32),
            "w2": normal(next(keys), (MLP_HIDDEN, D)),
            "b2": jnp.zeros((D,), jnp.float32),
        }
        params["stages"].append(sp)
    return params


# ------------------------------------ main ------------------------------------
if __name__ == "__main__":
    root = jax.random.PRNGKey(0)
    pkey, xkey = jax.random.split(root)
    params = init_params(pkey)
    x = jax.random.normal(xkey, (BATCH, IN_CH, IMG, IMG), dtype=jnp.float32)

    hidden, attn = cvt_encoder_forward(x, params, return_attn_wgts=True)
    hidden = jax.block_until_ready(hidden)
    attn = jax.block_until_ready(attn)

    N = (IMG // PATCH) ** 2
    assert hidden.shape == (BATCH, N, EMBED)
    assert len(attn) == NUM_STAGES
    assert all(a.shape == (BATCH, HEADS, N, N) for a in attn)
    assert bool(jnp.all(jnp.isfinite(hidden)))
    assert all(bool(jnp.all(jnp.isfinite(a))) for a in attn)
    print("KERNEL_OK")
</pallas_src>

<mosaic_0001>
module attributes {stable_mosaic.version = 11 : i64} {
  func.func @_embed_kernel(%arg0: i32, %arg1: memref<32x64xf32, #tpu.memory_space<vmem>>, %arg2: memref<64x32xf32, #tpu.memory_space<vmem>>, %arg3: memref<1x32xf32, #tpu.memory_space<vmem>>, %arg4: memref<1x32xf32, #tpu.memory_space<vmem>>, %arg5: memref<1x32xf32, #tpu.memory_space<vmem>>, %arg6: memref<32x32xf32, #tpu.memory_space<vmem>>) attributes {dimension_semantics = [#tpu.dimension_semantics<arbitrary>], iteration_bounds = array<i64: 1>, scalar_prefetch = 0 : i64, scratch_operands = 0 : i64, tpu.core_type = #tpu.core_type<tc>, window_params = [{pipeline_mode = #tpu.pipeline_mode<synchronous>, transform_indices = @transform_0, window_bounds = array<i64: 32, 64>}, {pipeline_mode = #tpu.pipeline_mode<synchronous>, transform_indices = @transform_1, window_bounds = array<i64: 64, 32>}, {pipeline_mode = #tpu.pipeline_mode<synchronous>, transform_indices = @transform_2, window_bounds = array<i64: 1, 32>}, {pipeline_mode = #tpu.pipeline_mode<synchronous>, transform_indices = @transform_3, window_bounds = array<i64: 1, 32>}, {pipeline_mode = #tpu.pipeline_mode<synchronous>, transform_indices = @transform_4, window_bounds = array<i64: 1, 32>}, {pipeline_mode = #tpu.pipeline_mode<synchronous>, transform_indices = @transform_5, window_bounds = array<i64: 32, 32>}]} {
    %c0 = arith.constant 0 : index
    %c0_0 = arith.constant 0 : index
    %0 = vector.load %arg1[%c0, %c0_0] : memref<32x64xf32, #tpu.memory_space<vmem>>, vector<32x64xf32>
    %c0_1 = arith.constant 0 : index
    %c0_2 = arith.constant 0 : index
    %1 = vector.load %arg2[%c0_1, %c0_2] : memref<64x32xf32, #tpu.memory_space<vmem>>, vector<64x32xf32>
    %cst = arith.constant dense<0.000000e+00> : vector<32x32xf32>
    %2 = tpu.matmul %0, %1, %cst {dimension_numbers = #tpu.dot_dimension_numbers<[1], [0], [0], [1], [0, 0, 1, 1], [], []>} : vector<32x64xf32>, vector<64x32xf32>, vector<32x32xf32> -> vector<32x32xf32>
    %c0_3 = arith.constant 0 : index
    %c0_4 = arith.constant 0 : index
    %3 = vector.load %arg3[%c0_3, %c0_4] : memref<1x32xf32, #tpu.memory_space<vmem>>, vector<1x32xf32>
    %4 = vector.broadcast %3 : vector<1x32xf32> to vector<32x32xf32>
    %5 = arith.addf %2, %4 : vector<32x32xf32>
    %c0_5 = arith.constant 0 : index
    %c0_6 = arith.constant 0 : index
    %6 = vector.load %arg4[%c0_5, %c0_6] : memref<1x32xf32, #tpu.memory_space<vmem>>, vector<1x32xf32>
    %c0_7 = arith.constant 0 : index
    %c0_8 = arith.constant 0 : index
    %7 = vector.load %arg5[%c0_7, %c0_8] : memref<1x32xf32, #tpu.memory_space<vmem>>, vector<1x32xf32>
    %cst_9 = arith.constant dense<0.000000e+00> : vector<32xf32>
    %8 = vector.multi_reduction <add>, %5, %cst_9 [1] : vector<32x32xf32> to vector<32xf32>
    %9 = vector.shape_cast %8 : vector<32xf32> to vector<32x1xf32>
    %cst_10 = arith.constant 3.200000e+01 : f32
    %10 = vector.broadcast %cst_10 : f32 to vector<32x1xf32>
    %11 = arith.divf %9, %10 : vector<32x1xf32>
    %12 = vector.broadcast %11 : vector<32x1xf32> to vector<32x32xf32>
    %13 = arith.subf %5, %12 : vector<32x32xf32>
    %14 = arith.mulf %13, %13 : vector<32x32xf32>
    %cst_11 = arith.constant dense<0.000000e+00> : vector<32xf32>
    %15 = vector.multi_reduction <add>, %14, %cst_11 [1] : vector<32x32xf32> to vector<32xf32>
    %16 = vector.shape_cast %15 : vector<32xf32> to vector<32x1xf32>
    %cst_12 = arith.constant 3.200000e+01 : f32
    %17 = vector.broadcast %cst_12 : f32 to vector<32x1xf32>
    %18 = arith.divf %16, %17 : vector<32x1xf32>
    %19 = vector.broadcast %11 : vector<32x1xf32> to vector<32x32xf32>
    %20 = arith.subf %5, %19 : vector<32x32xf32>
    %cst_13 = arith.constant 9.99999974E-6 : f32
    %21 = vector.broadcast %cst_13 : f32 to vector<32x1xf32>
    %22 = arith.addf %18, %21 : vector<32x1xf32>
    %23 = math.rsqrt %22 : vector<32x1xf32>
    %24 = vector.broadcast %23 : vector<32x1xf32> to vector<32x32xf32>
    %25 = arith.mulf %20, %24 : vector<32x32xf32>
    %26 = vector.broadcast %6 : vector<1x32xf32> to vector<32x32xf32>
    %27 = arith.mulf %25, %26 : vector<32x32xf32>
    %28 = vector.broadcast %7 : vector<1x32xf32> to vector<32x32xf32>
    %29 = arith.addf %27, %28 : vector<32x32xf32>
    %c0_14 = arith.constant 0 : index
    %c0_15 = arith.constant 0 : index
    %30 = vector.load %arg6[%c0_14, %c0_15] : memref<32x32xf32, #tpu.memory_space<vmem>>, vector<32x32xf32>
    tpu.vector_store %arg6[%c0_14, %c0_15], %29 {strides = array<i32>} : memref<32x32xf32, #tpu.memory_space<vmem>>, vector<32x32xf32>,
    return
  }
  func.func @transform_0(%arg0: i32) -> (i32, i32) {
    %c0_i32 = arith.constant 0 : i32
    %c0_i32_0 = arith.constant 0 : i32
    %c0_i32_1 = arith.constant 0 : i32
    return %c0_i32, %c0_i32_0 : i32, i32
  }
  func.func @transform_1(%arg0: i32) -> (i32, i32) {
    %c0_i32 = arith.constant 0 : i32
    %c0_i32_0 = arith.constant 0 : i32
    %c0_i32_1 = arith.constant 0 : i32
    return %c0_i32, %c0_i32_0 : i32, i32
  }
  func.func @transform_2(%arg0: i32) -> (i32, i32) {
    %c0_i32 = arith.constant 0 : i32
    %c0_i32_0 = arith.constant 0 : i32
    %c0_i32_1 = arith.constant 0 : i32
    return %c0_i32, %c0_i32_0 : i32, i32
  }
  func.func @transform_3(%arg0: i32) -> (i32, i32) {
    %c0_i32 = arith.constant 0 : i32
    %c0_i32_0 = arith.constant 0 : i32
    %c0_i32_1 = arith.constant 0 : i32
    return %c0_i32, %c0_i32_0 : i32, i32
  }
  func.func @transform_4(%arg0: i32) -> (i32, i32) {
    %c0_i32 = arith.constant 0 : i32
    %c0_i32_0 = arith.constant 0 : i32
    %c0_i32_1 = arith.constant 0 : i32
    return %c0_i32, %c0_i32_0 : i32, i32
  }
  func.func @transform_5(%arg0: i32) -> (i32, i32) {
    %c0_i32 = arith.constant 0 : i32
    %c0_i32_0 = arith.constant 0 : i32
    %c0_i32_1 = arith.constant 0 : i32
    return %c0_i32, %c0_i32_0 : i32, i32
  }
}

</mosaic_0001>

<bundles_post_ra>
// kernel: tpu_custom_call.1
= control target key start
LH: loop header
LB: loop body
LE: loop exit
PB: predicated region body
PF: predicated region fallthrough
CT: control target
= control target key end

     0   :  { %vm40_vm0 = vcmask 523264   ;;  %s440_s0 = inlined_call_operand.vmem [shape: f32[32,64], index: 0, kind: input, shape index: {}]   ;;  %s441_s1 = inlined_call_operand.vmem [shape: f32[64,32], index: 1, kind: input, shape index: {}]   ;;  %s442_s2 = inlined_call_operand.vmem [shape: f32[1,32], index: 2, kind: input, shape index: {}]   ;;  %s443_s3 = inlined_call_operand.vmem [shape: f32[1,32], index: 3, kind: input, shape index: {}]   ;;  %s444_s4 = inlined_call_operand.vmem [shape: f32[1,32], index: 4, kind: input, shape index: {}]   ;;  %s445_s5 = inlined_call_operand.hbm [shape: f32[32,32], index: 5, kind: output, shape index: {}]  }
   0x1   :  { %v25_v0 = vld [vmem:[%s441_s1] sm:$0xff]  ;;  %v26_v1 = vld [vmem:[%s441_s1 + $0x8] sm:$0xff]  ;;  %v27_v2 = vld [vmem:[%s441_s1 + $0x10] sm:$0xff] }
   0x2   :  { %v275_v3 = vpack.c.bf16 %v26_v1, %v25_v0  ;;  %v28_v4 = vld [vmem:[%s441_s1 + $0x18] sm:$0xff]  ;;  %v29_v6 = vld [vmem:[%s441_s1 + $0x20] sm:$0xff]  ;;  %v30_v7 = vld [vmem:[%s441_s1 + $0x28] sm:$0xff] }
   0x3   :  { %v279_v5 = vpack.c.bf16 %v28_v4, %v27_v2  ;;  %v21_v8 = vld [vmem:[%s440_s0] sm:$0xff]  ;;  %v23_v9 = vld [vmem:[%s440_s0 + $0x10] sm:$0xff] }
   0x4   :  { %276 = vmatprep.subr.bf16.mxu0 %v275_v3  ;;  %291 = vmatprep.subr.bf16.mxu1 %v275_v3 }
   0x5   :  { %278 = vmatpush3.bf16.msra.mxu0 %v275_v3  ;;  %295 = vmatpush3.bf16.msra.mxu1 %v275_v3 }
   0x6   :  { %10 = vsyncpa [#allocation3], 0  ;;  %280 = vmatprep.subr.bf16.mxu0 %v279_v5  ;;  %292 = vmatprep.subr.bf16.mxu1 %v279_v5  ;;  %v283_v10 = vpack.c.bf16 %v30_v7, %v29_v6  ;;  %v31_v11 = vld [vmem:[%s441_s1 + $0x30] sm:$0xff]  ;;  %v32_v12 = vld [vmem:[%s441_s1 + $0x38] sm:$0xff]  ;;  %vm140_vm1 = vcmask 261120  }
   0x7   :  { %269 = vmatprep.mubr.msk.f32.mxu0 %vm40_vm0, %v21_v8  ;;  %272 = vmatprep.mubr.msk.f32.mxu1 %vm40_vm0, %v23_v9  ;;  %v287_v13 = vpack.c.bf16 %v32_v12, %v31_v11  ;;  %v22_v14 = vld [vmem:[%s440_s0 + $0x8] sm:$0xff]  ;;  %v24_v15 = vld [vmem:[%s440_s0 + $0x18] sm:$0xff]  ;;  %v234_v16 = vld [vmem:[%s442_s2] ss:$0 sm:$0xff] }
   0x8   :  { %v239_v62 = vld [vmem:[%s443_s3] ss:$0 sm:$0xff]  ;;  %s334_s3 = smov [#allocation2]  }
   0x9   :  { %282 = vmatpush3.bf16.msra.mxu0 %v279_v5  ;;  %296 = vmatpush3.bf16.msra.mxu1 %v279_v5  ;;  %v240_v0 = vld [vmem:[%s444_s4] ss:$0 sm:$0xff]  ;;  %s223_s20 = sshll.u32 %s334_s3, 4  ;;  %s224_s20 = int_to_ptr.vmem [resolvable:$true] %s223_s20 }
   0xa   :  { %284 = vmatprep.subr.bf16.mxu0 %v283_v10  ;;  %293 = vmatprep.subr.bf16.mxu1 %v283_v10  ;;  %s310_s4 = scalar_lea.vmem %s224_s20, 512  ;;  %p315_p1 = scmp.lt.s32.totalorder %s224_s20, %s224_s20 }
   0xb   :  { %p311_p0 = scmp.ne.s32.totalorder %s224_s20, %s310_s4  ;;  %p316_p2 = scmp.lt.s32.totalorder %s310_s4, %s310_s4 }
   0xd   :  { %286 = vmatpush3.bf16.msra.mxu0 %v283_v10  ;;  %297 = vmatpush3.bf16.msra.mxu1 %v283_v10  ;;  %p317_p3 = por %p316_p2, %p315_p1 }
   0xe   :  { %288 = vmatprep.subr.bf16.mxu0 %v287_v13  ;;  %294 = vmatprep.subr.bf16.mxu1 %v287_v13 }
   0xf   :  { %p318_p4 = pnand %p317_p3, %p311_p0 }
  0x11   :  { %290 = vmatpush3.bf16.msra.mxu0 %v287_v13  ;;  %298 = vmatpush3.bf16.msra.mxu1 %v287_v13 }
  0x14   :  { %270 = vmatmul.mubr.msk.f32.vlgmr.msra.gmra.mrb[0].mxu0 %vm40_vm0, %v22_v14  ;;  %273 = vmatmul.mubr.msk.f32.vlgmr.msra.gmra.mrb[0].mxu1 %vm40_vm0, %v24_v15 }
  0xe7   :  { %v271_v17 = vpop.f32.mrb[0].mxu0  ;;  %v274_v18 = vpop.f32.mrb[0].mxu1 }
  0xe8   :  { %v119_v19 = vpop.f32.mrb[1].mxu0  ;;  %v129_v20 = vpop.f32.mrb[1].mxu1  ;;  %v135_v21 = vadd.f32 %v274_v18, %v234_v16  ;;  %v125_v24 = vadd.f32 %v271_v17, %v234_v16 }
  0xe9   :  { %v120_v22 = vadd.f32 %v234_v16, %v119_v19  ;;  %v130_v23 = vadd.f32 %v234_v16, %v129_v20 }
  0xea   :  { %v150_v27 = vsel %vm140_vm1, %v135_v21, 0.0  ;;  %v144_v28 = vsel %vm140_vm1, %v125_v24, 0.0 }
  0xeb   :  { %v147_v25 = vsel %vm140_vm1, %v130_v23, 0.0  ;;  %v141_v26 = vsel %vm140_vm1, %v120_v22, 0.0 }
  0xec   :  { %148 = vadd.xlane.f32.xlu1 %v147_v25  ;;  %142 = vadd.xlane.f32.xlu0 %v141_v26 }
  0xf0   :  { %151 = vadd.xlane.f32.xlu1 %v150_v27  ;;  %145 = vadd.xlane.f32.xlu0 %v144_v28 }
 0x179   :  { %v149_v29 = vpop.xlane.xlu1 %148  ;;  %v143_v30 = vpop.xlane.xlu0 %142 }
 0x17a   :  { %v156_v31 = vmul.f32 0.03125, %v149_v29  ;;  %v154_v32 = vmul.f32 0.03125, %v143_v30 }
 0x17c   :  { %v160_v33 = vsub.f32 %v130_v23, %v156_v31  ;;  %v158_v34 = vsub.f32 %v120_v22, %v154_v32 }
 0x17d   :  { %v152_v35 = vpop.xlane.xlu1 %151  ;;  %v146_v36 = vpop.xlane.xlu0 %145 }
 0x17e   :  { %v157_v37 = vmul.f32 0.03125, %v152_v35  ;;  %v155_v38 = vmul.f32 0.03125, %v146_v36  ;;  %v162_v39 = vmul.f32 %v158_v34, %v158_v34  ;;  %v164_v43 = vmul.f32 %v160_v33, %v160_v33 }
 0x180   :  { %v161_v40 = vsub.f32 %v135_v21, %v157_v37  ;;  %v159_v41 = vsub.f32 %v125_v24, %v155_v38  ;;  %v166_v42 = vsel %vm140_vm1, %v162_v39, 0.0  ;;  %v172_v45 = vsel %vm140_vm1, %v164_v43, 0.0 }
 0x181   :  { %167 = vadd.xlane.f32.xlu0 %v166_v42 }
 0x182   :  { %v163_v44 = vmul.f32 %v159_v41, %v159_v41  ;;  %v165_v47 = vmul.f32 %v161_v40, %v161_v40 }
 0x184   :  { %v169_v46 = vsel %vm140_vm1, %v163_v44, 0.0  ;;  %v175_v48 = vsel %vm140_vm1, %v165_v47, 0.0 }
 0x185   :  { %173 = vadd.xlane.f32.xlu0 %v172_v45  ;;  %170 = vadd.xlane.f32.xlu1 %v169_v46 }
 0x189   :  { %176 = vadd.xlane.f32.xlu1 %v175_v48 }
 0x20e   :  { %v168_v49 = vpop.xlane.xlu0 %167 }
 0x20f   :  { %v178_v50 = vmul.f32 0.03125, %v168_v49 }
 0x211   :  { %v182_v51 = vadd.f32 1e-05, %v178_v50 }
 0x212   :  { %v171_v52 = vpop.xlane.xlu1 %170  ;;  %v174_v53 = vpop.xlane.xlu0 %173 }
 0x213   :  { %302 = vrsqrt.f32 %v182_v51  ;;  %v179_v54 = vmul.f32 0.03125, %v171_v52  ;;  %v180_v55 = vmul.f32 0.03125, %v174_v53 }
 0x215   :  { %v183_v56 = vadd.f32 1e-05, %v179_v54  ;;  %v184_v57 = vadd.f32 1e-05, %v180_v55 }
 0x216   :  { %v177_v58 = vpop.xlane.xlu1 %176 }
 0x217   :  { %304 = vrsqrt.f32 %v183_v56  ;;  %v181_v59 = vmul.f32 0.03125, %v177_v58 }
 0x218   :  { %306 = vrsqrt.f32 %v184_v57 }
 0x219   :  { %v185_v60 = vadd.f32 1e-05, %v181_v59 }
 0x21b   :  { %308 = vrsqrt.f32 %v185_v60 }
 0x21d   :  { %v303_v61 = vpop.eup %302 }
 0x21e   :  { %v190_v63 = vmul.f32 %v303_v61, %v158_v34 }
 0x220   :  { %v200_v1 = vmul.f32 %v239_v62, %v190_v63 }
 0x221   :  { %v305_v2 = vpop.eup %304 }
 0x222   :  { %v307_v3 = vpop.eup %306  ;;  %v210_v4 = vadd.f32 %v240_v0, %v200_v1  ;;  %v191_v5 = vmul.f32 %v305_v2, %v159_v41 }
 0x223   :  { %v192_v6 = vmul.f32 %v307_v3, %v160_v33 }
 0x224   :  { %214 = vst.msk [vmem:[#allocation2] sm:$0xff] %vm140_vm1, %v210_v4  ;;  %v201_v7 = vmul.f32 %v239_v62, %v191_v5 }
 0x225   :  { %v309_v8 = vpop.eup %308  ;;  %v202_v9 = vmul.f32 %v239_v62, %v192_v6 }
 0x226   :  { %v211_v10 = vadd.f32 %v240_v0, %v201_v7  ;;  %v193_v11 = vmul.f32 %v309_v8, %v161_v40 }
 0x227   :  { %v212_v12 = vadd.f32 %v240_v0, %v202_v9 }
 0x228   :  { %215 = vst.msk [vmem:[#allocation2 + $0x8] sm:$0xff] %vm140_vm1, %v211_v10  ;;  %v203_v13 = vmul.f32 %v239_v62, %v193_v11 }
 0x229   :  { %216 = vst.msk [vmem:[#allocation2 + $0x10] sm:$0xff] %vm140_vm1, %v212_v12 }
 0x22a   :  { %v213_v14 = vadd.f32 %v240_v0, %v203_v13 }
 0x22c   :  { %217 = vst.msk [vmem:[#allocation2 + $0x18] sm:$0xff] %vm140_vm1, %v213_v14 }
 0x22d   :  { %321 = shalt.err (!%p318_p4)
}
 0x22e   :  { %s322_s23 = scalar_lea.hbm %s445_s5, 512 }
 0x22f   :  { %p323_p5 = scmp.ne.s32.totalorder %s445_s5, %s322_s23  ;;  %p326_p6 = scmp.lt.u32.totalorder %s322_s23, %s445_s5 }
 0x231   :  { %p328_p7 = pnand %p326_p6, %p323_p5 }
 0x233   :  { %331 = shalt.err (!%p328_p7)
}
 0x234   :  { %s335_s28 = smov 128   ;;  %s336_s29 = smov 8  }
 0x235   :  { %229 = dma.vmem_to_hbm [thread:$0]  %s224_s20, 512, %s445_s5, [#allocation3], %s335_s28, %s335_s28, %s336_s29  }
 0x236   :  { %332 = dma.done.wait [#allocation3], 512  }
 0x237   :  { %333 = vsyncadd [#allocation3], 4294966784 }
 0x238   :  { %233 = vsyncpa [#allocation3], 1 }

</bundles_post_ra>
